<compile_context>
chip_gen: v7x
topology: tpu7x:2x2x1
jax: 0.10.0
libtpu: 0.0.40
codegen_flags: <defaults>
</compile_context>

<pallas_src>
import functools
import math

import jax
import jax.numpy as jnp
from jax.experimental import pallas as pl
from jax.experimental.pallas import tpu as pltpu


# ------------------------------- helpers -------------------------------------

def _round_up(x, m):
    return ((x + m - 1) // m) * m


def _pad2(a, rows, cols):
    return jnp.pad(a, ((0, rows - a.shape[0]), (0, cols - a.shape[1])))


# ---------------------------- Pallas kernels ----------------------------------

def _encode_kernel(x_ref, w_ref, b_ref, o_ref):
    """X = relu(x @ enc_w + enc_b), row-tiled, bf16 MXU operands, f32 accumulation."""
    y = (jnp.dot(x_ref[...].astype(jnp.bfloat16), w_ref[...],
                 preferred_element_type=jnp.float32)
         + b_ref[...])
    o_ref[...] = jnp.maximum(y, 0.0).astype(o_ref.dtype)


def _layer_stage1_kernel(a_ref, xk_ref, xi_ref,
                         wl_cat_ref, b_cat_ref, wr_cat_ref,
                         q_cat_ref, qb_ref, mask_ref,
                         xcand_ref, qs_ref, qdpack_ref,
                         acc_ref, *, H):
    """Per node-row tile i, reduction over k:
         neigh = A_mean @ X                      (bf16 MXU, f32 VMEM accumulator)
       Final k step (shared neigh feeds BOTH SAGE branches via packed 256-wide weights):
         [X_ || Xg] = relu(neigh @ [Wl||Wlg] + X @ [Wr||Wrg] + [bl||blg])
         [Qs || Qd] = Xg @ [Qw1||Qw2] ; Qs += qb ; Qs *= mask   (re-associated edge MLP)
         emit x_cand (bf16), qs (bf16), packed [Qd || Qd*Qd] (bf16).
    """
    k = pl.program_id(1)

    @pl.when(k == 0)
    def _():
        acc_ref[...] = jnp.zeros_like(acc_ref)

    acc_ref[...] += jnp.dot(a_ref[...], xk_ref[...],
                            preferred_element_type=jnp.float32)

    @pl.when(k == pl.num_programs(1) - 1)
    def _():
        neigh = acc_ref[...].astype(jnp.bfloat16)
        x = xi_ref[...]                                   # bf16
        h = (jnp.dot(neigh, wl_cat_ref[...], preferred_element_type=jnp.float32)
             + jnp.dot(x, wr_cat_ref[...], preferred_element_type=jnp.float32)
             + b_cat_ref[...])
        h = jnp.maximum(h, 0.0)
        x_cand = h[:, :H]                                 # conv branch
        xg = h[:, H:].astype(jnp.bfloat16)                # conv_gg branch
        q = jnp.dot(xg, q_cat_ref[...], preferred_element_type=jnp.float32)
        qs = (q[:, :H] + qb_ref[...]) * mask_ref[...]
        qd = q[:, H:]
        xcand_ref[...] = x_cand.astype(xcand_ref.dtype)
        qs_ref[...] = qs.astype(qs_ref.dtype)
        # Note: Qd*Qd stored in bf16 compresses dynamic range slightly; hidden by tanh.
        qdpack_ref[...] = jnp.concatenate([qd, qd * qd], axis=1).astype(qdpack_ref.dtype)


def _layer_stage2_kernel(*refs, decode, H):
    """Per node-row tile i, reduction over k:
         [M1 || M2] = B @ [Qd || Qd*Qd]          (one 256-wide bf16 MXU dot per step)
       Final k step fuses tau (exact p=2 expansion, Qs pre-masked) and the blend:
         tau = tanh(Qs^2 + 2 Qs M1 + M2) ;  X_new = (1 - tau) X + tau X_
       If decode=True (last layer) also fuses the decoder: out = X_new @ dec_w + dec_b.
    """
    if decode:
        (b_ref, qdpack_ref, qs_ref, x_ref, xcand_ref, decw_ref, decb_ref,
         out_ref, m_ref) = refs
    else:
        (b_ref, qdpack_ref, qs_ref, x_ref, xcand_ref,
         out_ref, m_ref) = refs

    k = pl.program_id(1)

    @pl.when(k == 0)
    def _():
        m_ref[...] = jnp.zeros_like(m_ref)

    m_ref[...] += jnp.dot(b_ref[...], qdpack_ref[...],
                          preferred_element_type=jnp.float32)

    @pl.when(k == pl.num_programs(1) - 1)
    def _():
        qs = qs_ref[...].astype(jnp.float32)
        m = m_ref[...]
        m1 = m[:, :H]
        m2 = m[:, H:]
        tau = jnp.tanh(qs * (qs + 2.0 * m1) + m2)
        x_new = ((1.0 - tau) * x_ref[...].astype(jnp.float32)
                 + tau * xcand_ref[...].astype(jnp.float32))
        if decode:
            logits = (jnp.dot(x_new.astype(jnp.bfloat16), decw_ref[...],
                              preferred_element_type=jnp.float32)
                      + decb_ref[...])
            out_ref[...] = logits.astype(out_ref.dtype)
        else:
            out_ref[...] = x_new.astype(out_ref.dtype)


# ------------------------------ wrappers --------------------------------------

def encode(x, w, b, *, tile_i):
    n_pad, fin = x.shape
    fout = w.shape[1]
    return pl.pallas_call(
        _encode_kernel,
        out_shape=jax.ShapeDtypeStruct((n_pad, fout), jnp.bfloat16),
        grid=(n_pad // tile_i,),
        in_specs=[
            pl.BlockSpec((tile_i, fin), lambda i: (i, 0)),
            pl.BlockSpec((fin, fout), lambda i: (0, 0)),
            pl.BlockSpec((1, fout), lambda i: (0, 0)),
        ],
        out_specs=pl.BlockSpec((tile_i, fout), lambda i: (i, 0)),
        compiler_params=pltpu.CompilerParams(dimension_semantics=("parallel",)),
    )(x, w, b)


def layer_stage1(a_mean, X, params, mask, *, tile_i, tile_k):
    n_pad, H = X.shape
    g_i = n_pad // tile_i
    g_k = n_pad // tile_k
    row = lambda i, k: (i, 0)
    cst = lambda i, k: (0, 0)
    out_shape = (jax.ShapeDtypeStruct((n_pad, H), jnp.bfloat16),      # x_cand
                 jax.ShapeDtypeStruct((n_pad, H), jnp.bfloat16),      # qs (masked)
                 jax.ShapeDtypeStruct((n_pad, 2 * H), jnp.bfloat16))  # [Qd || Qd^2]
    return pl.pallas_call(
        functools.partial(_layer_stage1_kernel, H=H),
        out_shape=out_shape,
        grid=(g_i, g_k),
        in_specs=[
            pl.BlockSpec((tile_i, tile_k), lambda i, k: (i, k)),  # A_mean (bf16)
            pl.BlockSpec((tile_k, H), lambda i, k: (k, 0)),       # X (reduction view, bf16)
            pl.BlockSpec((tile_i, H), row),                       # X (row view, self term)
            pl.BlockSpec((H, 2 * H), cst),                        # [Wl || Wlg] bf16
            pl.BlockSpec((1, 2 * H), cst),                        # [bl || blg] f32
            pl.BlockSpec((H, 2 * H), cst),                        # [Wr || Wrg] bf16
            pl.BlockSpec((H, 2 * H), cst),                        # [Qw1 || Qw2] bf16
            pl.BlockSpec((1, H), cst),                            # qb f32
            pl.BlockSpec((tile_i, 1), row),                       # out-degree mask
        ],
        out_specs=(pl.BlockSpec((tile_i, H), row),
                   pl.BlockSpec((tile_i, H), row),
                   pl.BlockSpec((tile_i, 2 * H), row)),
        scratch_shapes=[pltpu.VMEM((tile_i, H), jnp.float32)],
        compiler_params=pltpu.CompilerParams(
            dimension_semantics=("parallel", "arbitrary")),
    )(a_mean, X, X,
      params["wl_cat"], params["b_cat"], params["wr_cat"],
      params["q_cat"], params["qb"], mask)


def layer_stage2(b_mean, qd_pack, qs, X, x_cand, *, tile_i, tile_k,
                 dec_w=None, dec_b=None):
    n_pad, H = X.shape
    g_i = n_pad // tile_i
    g_k = n_pad // tile_k
    decode = dec_w is not None
    row = lambda i, k: (i, 0)
    cst = lambda i, k: (0, 0)

    in_specs = [
        pl.BlockSpec((tile_i, tile_k), lambda i, k: (i, k)),      # B (bf16)
        pl.BlockSpec((tile_k, 2 * H), lambda i, k: (k, 0)),       # [Qd || Qd^2] (reduction)
        pl.BlockSpec((tile_i, H), row),                           # Qs (masked)
        pl.BlockSpec((tile_i, H), row),                           # X
        pl.BlockSpec((tile_i, H), row),                           # X_ (conv candidate)
    ]
    args = (b_mean, qd_pack, qs, X, x_cand)
    if decode:
        cpad = dec_w.shape[1]
        in_specs += [pl.BlockSpec((H, cpad), cst),                # dec_w bf16
                     pl.BlockSpec((1, cpad), cst)]                # dec_b f32
        args += (dec_w, dec_b)
        out_shape = jax.ShapeDtypeStruct((n_pad, cpad), jnp.float32)
        out_spec = pl.BlockSpec((tile_i, cpad), row)
    else:
        out_shape = jax.ShapeDtypeStruct((n_pad, H), jnp.bfloat16)
        out_spec = pl.BlockSpec((tile_i, H), row)

    return pl.pallas_call(
        functools.partial(_layer_stage2_kernel, decode=decode, H=H),
        out_shape=out_shape,
        grid=(g_i, g_k),
        in_specs=in_specs,
        out_specs=out_spec,
        scratch_shapes=[pltpu.VMEM((tile_i, 2 * H), jnp.float32)],
        compiler_params=pltpu.CompilerParams(
            dimension_semantics=("parallel", "arbitrary")),
    )(*args)


# ----------------------------- graph / params ---------------------------------

def build_graph_operators(edge_index, n_pad):
    """Dense mean operators (duplicate edges intentionally counted, matching
    PyG SAGEConv / torch_scatter mean-over-edges semantics)."""
    src = edge_index[0].astype(jnp.int32)
    dst = edge_index[1].astype(jnp.int32)
    ones = jnp.ones(src.shape, jnp.float32)
    # SAGE mean aggregation over incoming edges: neigh[d] = mean_{e: s->d} X[s].
    cnt_in = jnp.zeros((n_pad, n_pad), jnp.float32).at[dst, src].add(ones)
    a_mean = cnt_in / jnp.maximum(cnt_in.sum(axis=1, keepdims=True), 1.0)
    # Out-neighbor mean operator for G2's scatter(index=src, reduce='mean').
    cnt_out = jnp.zeros((n_pad, n_pad), jnp.float32).at[src, dst].add(ones)
    out_deg = cnt_out.sum(axis=1, keepdims=True)
    b_mean = cnt_out / jnp.maximum(out_deg, 1.0)
    # Nodes with no outgoing edges: empty segment -> scatter-mean yields 0.
    mask = (out_deg > 0.0).astype(jnp.float32)                   # (n_pad, 1)
    return a_mean.astype(jnp.bfloat16), b_mean.astype(jnp.bfloat16), mask


def init_params(key, nfeat, nhid, nclass):
    """PyTorch-style uniform init; weights (in, out), packed/padded for the kernels.
    Feature dim padded only to a multiple of 8; hidden/class dims to 128 lanes."""
    fpad = _round_up(nfeat, 8)
    hpad = _round_up(nhid, 128)
    cpad = _round_up(nclass, 128)
    keys = jax.random.split(key, 12)

    def u(k, fan_in, shape):
        b = fan_in ** -0.5
        return jax.random.uniform(k, shape, jnp.float32, -b, b)

    enc_w = _pad2(u(keys[0], nfeat, (nfeat, nhid)), fpad, hpad).astype(jnp.bfloat16)
    enc_b = _pad2(u(keys[1], nfeat, (1, nhid)), 1, hpad)
    dec_w = _pad2(u(keys[2], nhid, (nhid, nclass)), hpad, cpad).astype(jnp.bfloat16)
    dec_b = _pad2(u(keys[3], nhid, (1, nclass)), 1, cpad)
    # SAGEConv: lin_l (bias) on mean-aggregated neighbors, lin_r (no bias) on self.
    wl = _pad2(u(keys[4], nhid, (nhid, nhid)), hpad, hpad)
    bl = _pad2(u(keys[5], nhid, (1, nhid)), 1, hpad)
    wr = _pad2(u(keys[6], nhid, (nhid, nhid)), hpad, hpad)
    wlg = _pad2(u(keys[7], nhid, (nhid, nhid)), hpad, hpad)
    blg = _pad2(u(keys[8], nhid, (1, nhid)), 1, hpad)
    wrg = _pad2(u(keys[9], nhid, (nhid, nhid)), hpad, hpad)
    # G2's Q: Linear(2*nhid, nhid) split into src / dst halves.
    qw = u(keys[10], 2 * nhid, (2 * nhid, nhid))
    qb = _pad2(u(keys[11], 2 * nhid, (1, nhid)), 1, hpad)
    qw1 = _pad2(qw[:nhid], hpad, hpad)
    qw2 = _pad2(qw[nhid:], hpad, hpad)
    # 256-wide packed epilogue weights (bf16), biases kept f32.
    wl_cat = jnp.concatenate([wl, wlg], axis=1).astype(jnp.bfloat16)   # [Wl || Wlg]
    wr_cat = jnp.concatenate([wr, wrg], axis=1).astype(jnp.bfloat16)   # [Wr || Wrg]
    b_cat = jnp.concatenate([bl, blg], axis=1)                          # [bl || blg]
    q_cat = jnp.concatenate([qw1, qw2], axis=1).astype(jnp.bfloat16)    # [Qw1 || Qw2]
    return dict(enc_w=enc_w, enc_b=enc_b, dec_w=dec_w, dec_b=dec_b,
                wl_cat=wl_cat, wr_cat=wr_cat, b_cat=b_cat,
                q_cat=q_cat, qb=qb)


# -------------------------------- model ----------------------------------------

def g2_gnn_forward(x, edge_index, params, *, nclass, nlayers=2, p=2.0,
                   tile_i=1024, tile_k=512):
    if p != 2.0:
        # TODO(synk): general p needs per-edge |.|^p (index-driven gather +
        # segment-mean kernel); only the module default p == 2 is implemented here.
        raise NotImplementedError("only p == 2.0 is implemented")
    n = x.shape[0]
    step = tile_i * tile_k // math.gcd(tile_i, tile_k)
    n_pad = _round_up(n, step)
    nfeat = x.shape[1]
    fpad = params["enc_w"].shape[0]

    a_mean, b_mean, mask = build_graph_operators(edge_index, n_pad)
    x_pad = _pad2(x.astype(jnp.float32), n_pad, fpad)
    del nfeat

    # X = relu(enc(X))   (drop_in = 0 -> no dropout); X kept bf16 between kernels.
    X = encode(x_pad, params["enc_w"], params["enc_b"], tile_i=tile_i)

    out = None
    for layer in range(nlayers):
        # Stage 1: shared neigh = A_mean @ X, both SAGE branches, node-level Qs / packed Qd.
        x_cand, qs, qd_pack = layer_stage1(a_mean, X, params, mask,
                                           tile_i=tile_i, tile_k=tile_k)
        last = layer == nlayers - 1
        if last:
            # Stage 2 (+ fused decoder on the last layer): tau via p=2 expansion + blend.
            out = layer_stage2(b_mean, qd_pack, qs, X, x_cand,
                               tile_i=tile_i, tile_k=tile_k,
                               dec_w=params["dec_w"], dec_b=params["dec_b"])
        else:
            X = layer_stage2(b_mean, qd_pack, qs, X, x_cand,
                             tile_i=tile_i, tile_k=tile_k)

    # drop = 0 -> no dropout; strip node / class padding.
    return out[:n, :nclass]


# -------------------------------- main ------------------------------------------

if __name__ == "__main__":
    n_nodes, nfeat, nhid, nclass = 16, 8, 32, 4
    n_edges, nlayers, p = 48, 2, 2.0

    key = jax.random.PRNGKey(0)
    kx, ke, kp = jax.random.split(key, 3)

    x = jax.random.normal(kx, (n_nodes, nfeat), dtype=jnp.float32)
    edge_index = jax.random.randint(ke, (2, n_edges), 0, n_nodes, dtype=jnp.int32)
    params = init_params(kp, nfeat, nhid, nclass)

    out = g2_gnn_forward(x, edge_index, params, nclass=nclass,
                         nlayers=nlayers, p=p, tile_i=1024, tile_k=512)
    out = jax.block_until_ready(out)

    assert out.shape == (n_nodes, nclass)
    assert bool(jnp.all(jnp.isfinite(out)))
    print("KERNEL_OK")
</pallas_src>

<mosaic_0001>
module attributes {stable_mosaic.version = 11 : i64} {
  func.func @_encode_kernel(%arg0: i32, %arg1: memref<1024x8xf32, #tpu.memory_space<vmem>>, %arg2: memref<8x128xbf16, #tpu.memory_space<vmem>>, %arg3: memref<1x128xf32, #tpu.memory_space<vmem>>, %arg4: memref<1024x128xbf16, #tpu.memory_space<vmem>>) attributes {dimension_semantics = [#tpu.dimension_semantics<parallel>], iteration_bounds = array<i64: 1>, scalar_prefetch = 0 : i64, scratch_operands = 0 : i64, tpu.core_type = #tpu.core_type<tc>, window_params = [{transform_indices = @transform_0, window_bounds = array<i64: 1024, 8>}, {pipeline_mode = #tpu.pipeline_mode<synchronous>, transform_indices = @transform_1, window_bounds = array<i64: 8, 128>}, {pipeline_mode = #tpu.pipeline_mode<synchronous>, transform_indices = @transform_2, window_bounds = array<i64: 1, 128>}, {transform_indices = @transform_3, window_bounds = array<i64: 1024, 128>}]} {
    %c0 = arith.constant 0 : index
    %c0_0 = arith.constant 0 : index
    %0 = vector.load %arg1[%c0, %c0_0] : memref<1024x8xf32, #tpu.memory_space<vmem>>, vector<1024x8xf32>
    %1 = arith.truncf %0 : vector<1024x8xf32> to vector<1024x8xbf16>
    %c0_1 = arith.constant 0 : index
    %c0_2 = arith.constant 0 : index
    %2 = vector.load %arg2[%c0_1, %c0_2] : memref<8x128xbf16, #tpu.memory_space<vmem>>, vector<8x128xbf16>
    %cst = arith.constant dense<0.000000e+00> : vector<1024x128xf32>
    %3 = tpu.matmul %1, %2, %cst {dimension_numbers = #tpu.dot_dimension_numbers<[1], [0], [0], [1], [0, 0, 1, 1], [], []>} : vector<1024x8xbf16>, vector<8x128xbf16>, vector<1024x128xf32> -> vector<1024x128xf32>
    %c0_3 = arith.constant 0 : index
    %c0_4 = arith.constant 0 : index
    %4 = vector.load %arg3[%c0_3, %c0_4] : memref<1x128xf32, #tpu.memory_space<vmem>>, vector<1x128xf32>
    %5 = vector.broadcast %4 : vector<1x128xf32> to vector<1024x128xf32>
    %6 = arith.addf %3, %5 : vector<1024x128xf32>
    %cst_5 = arith.constant 0.000000e+00 : f32
    %7 = vector.broadcast %cst_5 : f32 to vector<1024x128xf32>
    %8 = arith.maximumf %6, %7 : vector<1024x128xf32>
    %9 = arith.truncf %8 : vector<1024x128xf32> to vector<1024x128xbf16>
    %c0_6 = arith.constant 0 : index
    %c0_7 = arith.constant 0 : index
    %10 = vector.load %arg4[%c0_6, %c0_7] : memref<1024x128xbf16, #tpu.memory_space<vmem>>, vector<1024x128xbf16>
    tpu.vector_store %arg4[%c0_6, %c0_7], %9 {strides = array<i32>} : memref<1024x128xbf16, #tpu.memory_space<vmem>>, vector<1024x128xbf16>,
    return
  }
  func.func @transform_0(%arg0: i32) -> (i32, i32) {
    %c0_i32 = arith.constant 0 : i32
    %c0_i32_0 = arith.constant 0 : i32
    return %arg0, %c0_i32 : i32, i32
  }
  func.func @transform_1(%arg0: i32) -> (i32, i32) {
    %c0_i32 = arith.constant 0 : i32
    %c0_i32_0 = arith.constant 0 : i32
    %c0_i32_1 = arith.constant 0 : i32
    return %c0_i32, %c0_i32_0 : i32, i32
  }
  func.func @transform_2(%arg0: i32) -> (i32, i32) {
    %c0_i32 = arith.constant 0 : i32
    %c0_i32_0 = arith.constant 0 : i32
    %c0_i32_1 = arith.constant 0 : i32
    return %c0_i32, %c0_i32_0 : i32, i32
  }
  func.func @transform_3(%arg0: i32) -> (i32, i32) {
    %c0_i32 = arith.constant 0 : i32
    %c0_i32_0 = arith.constant 0 : i32
    return %arg0, %c0_i32 : i32, i32
  }
}

</mosaic_0001>

<bundles_post_ra>
// kernel: tpu_custom_call.1
= control target key start
LH: loop header
LB: loop body
LE: loop exit
PB: predicated region body
PF: predicated region fallthrough
CT: control target
= control target key end

     0   :  { %vm409_vm0 = vcmask 1043456   ;;  %vm216_vm1 = vcmask 64512   ;;  %s3291_s0 = inlined_call_operand.vmem [shape: f32[1024,8], index: 0, kind: input, shape index: {}]   ;;  %s3292_s1 = inlined_call_operand.vmem [shape: bf16[8,128], index: 1, kind: input, shape index: {}]   ;;  %s3293_s2 = inlined_call_operand.vmem [shape: f32[1,128], index: 2, kind: input, shape index: {}]   ;;  %s3294_s3 = inlined_call_operand.hbm [shape: bf16[1024,128], index: 3, kind: output, shape index: {}]  }
   0x1   :  { %v208_v0 = vld [vmem:[%s3292_s1] sm:$0xf]  ;;  %v17_v2 = vld [vmem:[%s3291_s0 + $0x8] sm:$0xff]  ;;  %v18_v7 = vld [vmem:[%s3291_s0 + $0x10] sm:$0xff] }
   0x2   :  { %v16_v1 = vld [vmem:[%s3291_s0] sm:$0xff]  ;;  %2643 = vmatprep.subr.msk.bf16.mxu0 %vm409_vm0, %v208_v0  ;;  %2644 = vmatprep.subr.msk.bf16.mxu1 %vm409_vm0, %v208_v0  ;;  %v411_v3 = vsel %vm409_vm0, %v208_v0, 0  ;;  %v81_v6 = vld [vmem:[%s3291_s0 + $0x208] sm:$0xff]  ;;  %v19_v9 = vld [vmem:[%s3291_s0 + $0x18] sm:$0xff] }
   0x3   :  { %v144_v4 = vpack.c.bf16 %v17_v2, %v16_v1  ;;  %v80_v5 = vld [vmem:[%s3291_s0 + $0x200] sm:$0xff]  ;;  %2512 = vmatpush3.bf16.msra.mxu0 %v411_v3  ;;  %2642 = vmatpush3.bf16.msra.mxu1 %v411_v3  ;;  %v82_v10 = vld [vmem:[%s3291_s0 + $0x210] sm:$0xff]  ;;  %v83_v11 = vld [vmem:[%s3291_s0 + $0x218] sm:$0xff]  ;;  %v145_v12 = vpack.c.bf16 %v19_v9, %v18_v7 }
   0x4   :  { %v176_v8 = vpack.c.bf16 %v81_v6, %v80_v5  ;;  %v177_v13 = vpack.c.bf16 %v83_v11, %v82_v10  ;;  %v20_v14 = vld [vmem:[%s3291_s0 + $0x20] sm:$0xff]  ;;  %v21_v15 = vld [vmem:[%s3291_s0 + $0x28] sm:$0xff]  ;;  %v22_v20 = vld [vmem:[%s3291_s0 + $0x30] sm:$0xff] }
   0x5   :  { %2513 = vmatprep.mubr.msk.bf16.mxu0 %vm216_vm1, %v144_v4  ;;  %v84_v16 = vld [vmem:[%s3291_s0 + $0x220] sm:$0xff]  ;;  %v146_v17 = vpack.c.bf16 %v21_v15, %v20_v14  ;;  %v85_v18 = vld [vmem:[%s3291_s0 + $0x228] sm:$0xff]  ;;  %v23_v21 = vld [vmem:[%s3291_s0 + $0x38] sm:$0xff] }
   0x6   :  { %2577 = vmatprep.mubr.msk.bf16.mxu1 %vm216_vm1, %v176_v8  ;;  %2514 = vmatmul.mubr.msk.bf16.vlgmr.msra.gmra.mrb[0].mxu0 %vm216_vm1, %v145_v12  ;;  %v178_v19 = vpack.c.bf16 %v85_v18, %v84_v16  ;;  %v86_v22 = vld [vmem:[%s3291_s0 + $0x230] sm:$0xff]  ;;  %v87_v23 = vld [vmem:[%s3291_s0 + $0x238] sm:$0xff]  ;;  %v24_v24 = vld [vmem:[%s3291_s0 + $0x40] sm:$0xff]  ;;  %v147_v28 = vpack.c.bf16 %v23_v21, %v22_v20 }
   0x7   :  { %2578 = vmatmul.mubr.msk.bf16.vlgmr.msra.gmra.mrb[0].mxu1 %vm216_vm1, %v177_v13  ;;  %2517 = vmatprep.mubr.msk.bf16.mxu0 %vm216_vm1, %v146_v17  ;;  %v25_v25 = vld [vmem:[%s3291_s0 + $0x48] sm:$0xff]  ;;  %v88_v26 = vld [vmem:[%s3291_s0 + $0x240] sm:$0xff]  ;;  %v179_v29 = vpack.c.bf16 %v87_v23, %v86_v22  ;;  %v26_v32 = vld [vmem:[%s3291_s0 + $0x50] sm:$0xff] }
   0x8   :  { %2581 = vmatprep.mubr.msk.bf16.mxu1 %vm216_vm1, %v178_v19  ;;  %v89_v27 = vld [vmem:[%s3291_s0 + $0x248] sm:$0xff]  ;;  %v148_v30 = vpack.c.bf16 %v25_v25, %v24_v24  ;;  %v27_v33 = vld [vmem:[%s3291_s0 + $0x58] sm:$0xff]  ;;  %v90_v34 = vld [vmem:[%s3291_s0 + $0x250] sm:$0xff] }
   0x9   :  { %v180_v31 = vpack.c.bf16 %v89_v27, %v88_v26  ;;  %v91_v35 = vld [vmem:[%s3291_s0 + $0x258] sm:$0xff]  ;;  %v28_v36 = vld [vmem:[%s3291_s0 + $0x60] sm:$0xff]  ;;  %v29_v37 = vld [vmem:[%s3291_s0 + $0x68] sm:$0xff]  ;;  %v149_v40 = vpack.c.bf16 %v27_v33, %v26_v32 }
   0xa   :  { %v92_v38 = vld [vmem:[%s3291_s0 + $0x260] sm:$0xff]  ;;  %v93_v39 = vld [vmem:[%s3291_s0 + $0x268] sm:$0xff]  ;;  %v181_v41 = vpack.c.bf16 %v91_v35, %v90_v34  ;;  %v150_v42 = vpack.c.bf16 %v29_v37, %v28_v36  ;;  %v30_v44 = vld [vmem:[%s3291_s0 + $0x70] sm:$0xff] }
   0xb   :  { %v182_v43 = vpack.c.bf16 %v93_v39, %v92_v38  ;;  %v31_v45 = vld [vmem:[%s3291_s0 + $0x78] sm:$0xff]  ;;  %v94_v46 = vld [vmem:[%s3291_s0 + $0x270] sm:$0xff]  ;;  %v32_v48 = vld [vmem:[%s3291_s0 + $0x80] sm:$0xff] }
   0xc   :  { %v95_v47 = vld [vmem:[%s3291_s0 + $0x278] sm:$0xff]  ;;  %v33_v49 = vld [vmem:[%s3291_s0 + $0x88] sm:$0xff]  ;;  %v96_v50 = vld [vmem:[%s3291_s0 + $0x280] sm:$0xff]  ;;  %v151_v52 = vpack.c.bf16 %v31_v45, %v30_v44 }
   0xd   :  { %v97_v51 = vld [vmem:[%s3291_s0 + $0x288] sm:$0xff]  ;;  %v183_v53 = vpack.c.bf16 %v95_v47, %v94_v46  ;;  %v152_v54 = vpack.c.bf16 %v33_v49, %v32_v48  ;;  %v34_v56 = vld [vmem:[%s3291_s0 + $0x90] sm:$0xff]  ;;  %v35_v57 = vld [vmem:[%s3291_s0 + $0x98] sm:$0xff] }
   0xe   :  { %2518 = vmatmul.mubr.msk.bf16.gmra.mrb[4].mxu0 %vm216_vm1, %v147_v28  ;;  %v184_v55 = vpack.c.bf16 %v97_v51, %v96_v50  ;;  %v98_v58 = vld [vmem:[%s3291_s0 + $0x290] sm:$0xff]  ;;  %v99_v59 = vld [vmem:[%s3291_s0 + $0x298] sm:$0xff]  ;;  %v36_v60 = vld [vmem:[%s3291_s0 + $0xa0] sm:$0xff]  ;;  %v153_v0 = vpack.c.bf16 %v35_v57, %v34_v56 }
   0xf   :  { %2582 = vmatmul.mubr.msk.bf16.gmra.mrb[4].mxu1 %vm216_vm1, %v179_v29  ;;  %2521 = vmatprep.mubr.msk.bf16.mxu0 %vm216_vm1, %v148_v30  ;;  %v37_v61 = vld [vmem:[%s3291_s0 + $0xa8] sm:$0xff]  ;;  %v100_v62 = vld [vmem:[%s3291_s0 + $0x2a0] sm:$0xff]  ;;  %v185_v1 = vpack.c.bf16 %v99_v59, %v98_v58  ;;  %v38_v4 = vld [vmem:[%s3291_s0 + $0xb0] sm:$0xff] }
  0x10   :  { %2585 = vmatprep.mubr.msk.bf16.mxu1 %vm216_vm1, %v180_v31  ;;  %v101_v63 = vld [vmem:[%s3291_s0 + $0x2a8] sm:$0xff]  ;;  %v154_v2 = vpack.c.bf16 %v37_v61, %v36_v60  ;;  %v39_v5 = vld [vmem:[%s3291_s0 + $0xb8] sm:$0xff]  ;;  %v102_v6 = vld [vmem:[%s3291_s0 + $0x2b0] sm:$0xff] }
  0x11   :  { %v186_v3 = vpack.c.bf16 %v101_v63, %v100_v62  ;;  %v103_v7 = vld [vmem:[%s3291_s0 + $0x2b8] sm:$0xff]  ;;  %v40_v8 = vld [vmem:[%s3291_s0 + $0xc0] sm:$0xff]  ;;  %v41_v9 = vld [vmem:[%s3291_s0 + $0xc8] sm:$0xff]  ;;  %v155_v12 = vpack.c.bf16 %v39_v5, %v38_v4 }
  0x12   :  { %v104_v10 = vld [vmem:[%s3291_s0 + $0x2c0] sm:$0xff]  ;;  %v105_v11 = vld [vmem:[%s3291_s0 + $0x2c8] sm:$0xff]  ;;  %v187_v13 = vpack.c.bf16 %v103_v7, %v102_v6  ;;  %v156_v14 = vpack.c.bf16 %v41_v9, %v40_v8 }
  0x13   :  { %v188_v15 = vpack.c.bf16 %v105_v11, %v104_v10 }
  0x16   :  { %2522 = vmatmul.mubr.msk.bf16.gmra.mrb[8].mxu0 %vm216_vm1, %v149_v40 }
  0x17   :  { %2586 = vmatmul.mubr.msk.bf16.gmra.mrb[8].mxu1 %vm216_vm1, %v181_v41  ;;  %2525 = vmatprep.mubr.msk.bf16.mxu0 %vm216_vm1, %v150_v42 }
  0x18   :  { %2589 = vmatprep.mubr.msk.bf16.mxu1 %vm216_vm1, %v182_v43 }
  0x1e   :  { %2526 = vmatmul.mubr.msk.bf16.gmra.mrb[12].mxu0 %vm216_vm1, %v151_v52 }
  0x1f   :  { %2590 = vmatmul.mubr.msk.bf16.gmra.mrb[12].mxu1 %vm216_vm1, %v183_v53  ;;  %2529 = vmatprep.mubr.msk.bf16.mxu0 %vm216_vm1, %v152_v54 }
  0x20   :  { %2593 = vmatprep.mubr.msk.bf16.mxu1 %vm216_vm1, %v184_v55 }
  0x26   :  { %2530 = vmatmul.mubr.msk.bf16.gmra.mrb[16].mxu0 %vm216_vm1, %v153_v0 }
  0x27   :  { %2594 = vmatmul.mubr.msk.bf16.gmra.mrb[16].mxu1 %vm216_vm1, %v185_v1  ;;  %2533 = vmatprep.mubr.msk.bf16.mxu0 %vm216_vm1, %v154_v2 }
  0x28   :  { %2597 = vmatprep.mubr.msk.bf16.mxu1 %vm216_vm1, %v186_v3 }
  0x29   :  { %8 = vsyncpa [#allocation3], 0  ;;  %v42_v16 = vld [vmem:[%s3291_s0 + $0xd0] sm:$0xff]  ;;  %v43_v17 = vld [vmem:[%s3291_s0 + $0xd8] sm:$0xff] }
  0x2a   :  { %v106_v18 = vld [vmem:[%s3291_s0 + $0x2d0] sm:$0xff]  ;;  %v107_v19 = vld [vmem:[%s3291_s0 + $0x2d8] sm:$0xff]  ;;  %v44_v20 = vld [vmem:[%s3291_s0 + $0xe0] sm:$0xff]  ;;  %v157_v24 = vpack.c.bf16 %v43_v17, %v42_v16 }
  0x2b   :  { %v45_v21 = vld [vmem:[%s3291_s0 + $0xe8] sm:$0xff]  ;;  %v108_v22 = vld [vmem:[%s3291_s0 + $0x2e0] sm:$0xff]  ;;  %v189_v25 = vpack.c.bf16 %v107_v19, %v106_v18  ;;  %v46_v28 = vld [vmem:[%s3291_s0 + $0xf0] sm:$0xff] }
  0x2c   :  { %v109_v23 = vld [vmem:[%s3291_s0 + $0x2e8] sm:$0xff]  ;;  %v158_v26 = vpack.c.bf16 %v45_v21, %v44_v20  ;;  %v47_v29 = vld [vmem:[%s3291_s0 + $0xf8] sm:$0xff]  ;;  %v110_v30 = vld [vmem:[%s3291_s0 + $0x2f0] sm:$0xff] }
  0x2d   :  { %v190_v27 = vpack.c.bf16 %v109_v23, %v108_v22  ;;  %v111_v31 = vld [vmem:[%s3291_s0 + $0x2f8] sm:$0xff]  ;;  %v48_v32 = vld [vmem:[%s3291_s0 + $0x100] sm:$0xff]  ;;  %v49_v33 = vld [vmem:[%s3291_s0 + $0x108] sm:$0xff]  ;;  %v159_v36 = vpack.c.bf16 %v47_v29, %v46_v28 }
  0x2e   :  { %2534 = vmatmul.mubr.msk.bf16.gmra.mrb[20].mxu0 %vm216_vm1, %v155_v12  ;;  %v112_v34 = vld [vmem:[%s3291_s0 + $0x300] sm:$0xff]  ;;  %v113_v35 = vld [vmem:[%s3291_s0 + $0x308] sm:$0xff]  ;;  %v191_v37 = vpack.c.bf16 %v111_v31, %v110_v30  ;;  %v160_v38 = vpack.c.bf16 %v49_v33, %v48_v32  ;;  %v50_v40 = vld [vmem:[%s3291_s0 + $0x110] sm:$0xff] }
  0x2f   :  { %2598 = vmatmul.mubr.msk.bf16.gmra.mrb[20].mxu1 %vm216_vm1, %v187_v13  ;;  %2537 = vmatprep.mubr.msk.bf16.mxu0 %vm216_vm1, %v156_v14  ;;  %v192_v39 = vpack.c.bf16 %v113_v35, %v112_v34  ;;  %v51_v41 = vld [vmem:[%s3291_s0 + $0x118] sm:$0xff]  ;;  %v114_v42 = vld [vmem:[%s3291_s0 + $0x310] sm:$0xff]  ;;  %v52_v44 = vld [vmem:[%s3291_s0 + $0x120] sm:$0xff] }
  0x30   :  { %2601 = vmatprep.mubr.msk.bf16.mxu1 %vm216_vm1, %v188_v15  ;;  %v115_v43 = vld [vmem:[%s3291_s0 + $0x318] sm:$0xff]  ;;  %v53_v45 = vld [vmem:[%s3291_s0 + $0x128] sm:$0xff]  ;;  %v116_v46 = vld [vmem:[%s3291_s0 + $0x320] sm:$0xff]  ;;  %v161_v48 = vpack.c.bf16 %v51_v41, %v50_v40 }
  0x31   :  { %v117_v47 = vld [vmem:[%s3291_s0 + $0x328] sm:$0xff]  ;;  %v193_v49 = vpack.c.bf16 %v115_v43, %v114_v42  ;;  %v162_v50 = vpack.c.bf16 %v53_v45, %v52_v44  ;;  %v54_v52 = vld [vmem:[%s3291_s0 + $0x130] sm:$0xff]  ;;  %v55_v53 = vld [vmem:[%s3291_s0 + $0x138] sm:$0xff] }
  0x32   :  { %v194_v51 = vpack.c.bf16 %v117_v47, %v116_v46  ;;  %v118_v54 = vld [vmem:[%s3291_s0 + $0x330] sm:$0xff]  ;;  %v119_v55 = vld [vmem:[%s3291_s0 + $0x338] sm:$0xff]  ;;  %v56_v56 = vld [vmem:[%s3291_s0 + $0x140] sm:$0xff]  ;;  %v163_v60 = vpack.c.bf16 %v55_v53, %v54_v52 }
  0x33   :  { %v57_v57 = vld [vmem:[%s3291_s0 + $0x148] sm:$0xff]  ;;  %v120_v58 = vld [vmem:[%s3291_s0 + $0x340] sm:$0xff]  ;;  %v195_v61 = vpack.c.bf16 %v119_v55, %v118_v54  ;;  %v58_v0 = vld [vmem:[%s3291_s0 + $0x150] sm:$0xff] }
  0x34   :  { %v121_v59 = vld [vmem:[%s3291_s0 + $0x348] sm:$0xff]  ;;  %v164_v62 = vpack.c.bf16 %v57_v57, %v56_v56  ;;  %v59_v1 = vld [vmem:[%s3291_s0 + $0x158] sm:$0xff]  ;;  %v122_v2 = vld [vmem:[%s3291_s0 + $0x350] sm:$0xff] }
  0x35   :  { %v196_v63 = vpack.c.bf16 %v121_v59, %v120_v58  ;;  %v123_v3 = vld [vmem:[%s3291_s0 + $0x358] sm:$0xff]  ;;  %v60_v4 = vld [vmem:[%s3291_s0 + $0x160] sm:$0xff]  ;;  %v61_v5 = vld [vmem:[%s3291_s0 + $0x168] sm:$0xff]  ;;  %v165_v8 = vpack.c.bf16 %v59_v1, %v58_v0 }
  0x36   :  { %2538 = vmatmul.mubr.msk.bf16.gmra.mrb[24].mxu0 %vm216_vm1, %v157_v24  ;;  %v124_v6 = vld [vmem:[%s3291_s0 + $0x360] sm:$0xff]  ;;  %v125_v7 = vld [vmem:[%s3291_s0 + $0x368] sm:$0xff]  ;;  %v197_v9 = vpack.c.bf16 %v123_v3, %v122_v2  ;;  %v166_v10 = vpack.c.bf16 %v61_v5, %v60_v4  ;;  %v62_v12 = vld [vmem:[%s3291_s0 + $0x170] sm:$0xff] }
  0x37   :  { %2602 = vmatmul.mubr.msk.bf16.gmra.mrb[24].mxu1 %vm216_vm1, %v189_v25  ;;  %2541 = vmatprep.mubr.msk.bf16.mxu0 %vm216_vm1, %v158_v26  ;;  %v198_v11 = vpack.c.bf16 %v125_v7, %v124_v6  ;;  %v63_v13 = vld [vmem:[%s3291_s0 + $0x178] sm:$0xff]  ;;  %v126_v14 = vld [vmem:[%s3291_s0 + $0x370] sm:$0xff]  ;;  %v64_v16 = vld [vmem:[%s3291_s0 + $0x180] sm:$0xff] }
  0x38   :  { %2605 = vmatprep.mubr.msk.bf16.mxu1 %vm216_vm1, %v190_v27  ;;  %v127_v15 = vld [vmem:[%s3291_s0 + $0x378] sm:$0xff]  ;;  %v65_v17 = vld [vmem:[%s3291_s0 + $0x188] sm:$0xff]  ;;  %v128_v18 = vld [vmem:[%s3291_s0 + $0x380] sm:$0xff]  ;;  %v167_v20 = vpack.c.bf16 %v63_v13, %v62_v12 }
  0x39   :  { %v129_v19 = vld [vmem:[%s3291_s0 + $0x388] sm:$0xff]  ;;  %v199_v21 = vpack.c.bf16 %v127_v15, %v126_v14  ;;  %v168_v22 = vpack.c.bf16 %v65_v17, %v64_v16  ;;  %v66_v24 = vld [vmem:[%s3291_s0 + $0x190] sm:$0xff]  ;;  %v67_v25 = vld [vmem:[%s3291_s0 + $0x198] sm:$0xff] }
  0x3a   :  { %v200_v23 = vpack.c.bf16 %v129_v19, %v128_v18  ;;  %v130_v26 = vld [vmem:[%s3291_s0 + $0x390] sm:$0xff]  ;;  %v131_v27 = vld [vmem:[%s3291_s0 + $0x398] sm:$0xff]  ;;  %v68_v28 = vld [vmem:[%s3291_s0 + $0x1a0] sm:$0xff]  ;;  %v169_v32 = vpack.c.bf16 %v67_v25, %v66_v24 }
  0x3b   :  { %v69_v29 = vld [vmem:[%s3291_s0 + $0x1a8] sm:$0xff]  ;;  %v132_v30 = vld [vmem:[%s3291_s0 + $0x3a0] sm:$0xff]  ;;  %v201_v33 = vpack.c.bf16 %v131_v27, %v130_v26 }
  0x3c   :  { %v133_v31 = vld [vmem:[%s3291_s0 + $0x3a8] sm:$0xff]  ;;  %v170_v34 = vpack.c.bf16 %v69_v29, %v68_v28  ;;  %v72_v40 = vld [vmem:[%s3291_s0 + $0x1c0] sm:$0xff] }
  0x3d   :  { %v202_v35 = vpack.c.bf16 %v133_v31, %v132_v30  ;;  %v73_v41 = vld [vmem:[%s3291_s0 + $0x1c8] sm:$0xff]  ;;  %v136_v42 = vld [vmem:[%s3291_s0 + $0x3c0] sm:$0xff] }
  0x3e   :  { %2542 = vmatmul.mubr.msk.bf16.gmra.mrb[28].mxu0 %vm216_vm1, %v159_v36  ;;  %v70_v36 = vld [vmem:[%s3291_s0 + $0x1b0] sm:$0xff]  ;;  %v137_v43 = vld [vmem:[%s3291_s0 + $0x3c8] sm:$0xff]  ;;  %v172_v46 = vpack.c.bf16 %v73_v41, %v72_v40  ;;  %v76_v52 = vld [vmem:[%s3291_s0 + $0x1e0] sm:$0xff] }
  0x3f   :  { %2606 = vmatmul.mubr.msk.bf16.gmra.mrb[28].mxu1 %vm216_vm1, %v191_v37  ;;  %2545 = vmatprep.mubr.msk.bf16.mxu0 %vm216_vm1, %v160_v38  ;;  %v71_v37 = vld [vmem:[%s3291_s0 + $0x1b8] sm:$0xff]  ;;  %v134_v38 = vld [vmem:[%s3291_s0 + $0x3b0] sm:$0xff]  ;;  %v204_v47 = vpack.c.bf16 %v137_v43, %v136_v42  ;;  %v77_v53 = vld [vmem:[%s3291_s0 + $0x1e8] sm:$0xff] }
  0x40   :  { %2609 = vmatprep.mubr.msk.bf16.mxu1 %vm216_vm1, %v192_v39  ;;  %v135_v39 = vld [vmem:[%s3291_s0 + $0x3b8] sm:$0xff]  ;;  %v171_v44 = vpack.c.bf16 %v71_v37, %v70_v36  ;;  %v140_v54 = vld [vmem:[%s3291_s0 + $0x3e0] sm:$0xff]  ;;  %v141_v55 = vld [vmem:[%s3291_s0 + $0x3e8] sm:$0xff]  ;;  %v174_v58 = vpack.c.bf16 %v77_v53, %v76_v52 }
  0x41   :  { %v203_v45 = vpack.c.bf16 %v135_v39, %v134_v38  ;;  %v206_v59 = vpack.c.bf16 %v141_v55, %v140_v54  ;;  %v3149_v2 = vld [vmem:[%s3293_s2] ss:$0 sm:$0xff] }
  0x46   :  { %2546 = vmatmul.mubr.msk.bf16.gmra.mrb[32].mxu0 %vm216_vm1, %v161_v48  ;;  %v74_v48 = vld [vmem:[%s3291_s0 + $0x1d0] sm:$0xff] }
  0x47   :  { %2610 = vmatmul.mubr.msk.bf16.gmra.mrb[32].mxu1 %vm216_vm1, %v193_v49  ;;  %2549 = vmatprep.mubr.msk.bf16.mxu0 %vm216_vm1, %v162_v50  ;;  %v75_v49 = vld [vmem:[%s3291_s0 + $0x1d8] sm:$0xff]  ;;  %v138_v50 = vld [vmem:[%s3291_s0 + $0x3d0] sm:$0xff] }
  0x48   :  { %2613 = vmatprep.mubr.msk.bf16.mxu1 %vm216_vm1, %v194_v51  ;;  %v139_v51 = vld [vmem:[%s3291_s0 + $0x3d8] sm:$0xff]  ;;  %v173_v56 = vpack.c.bf16 %v75_v49, %v74_v48 }
  0x49   :  { %v205_v57 = vpack.c.bf16 %v139_v51, %v138_v50 }
  0x4e   :  { %2550 = vmatmul.mubr.msk.bf16.gmra.mrb[36].mxu0 %vm216_vm1, %v163_v60  ;;  %v78_v60 = vld [vmem:[%s3291_s0 + $0x1f0] sm:$0xff] }
  0x4f   :  { %2614 = vmatmul.mubr.msk.bf16.gmra.mrb[36].mxu1 %vm216_vm1, %v195_v61  ;;  %2553 = vmatprep.mubr.msk.bf16.mxu0 %vm216_vm1, %v164_v62  ;;  %v79_v61 = vld [vmem:[%s3291_s0 + $0x1f8] sm:$0xff]  ;;  %v142_v62 = vld [vmem:[%s3291_s0 + $0x3f0] sm:$0xff] }
  0x50   :  { %2617 = vmatprep.mubr.msk.bf16.mxu1 %vm216_vm1, %v196_v63  ;;  %v143_v63 = vld [vmem:[%s3291_s0 + $0x3f8] sm:$0xff]  ;;  %v175_v0 = vpack.c.bf16 %v79_v61, %v78_v60  ;;  %s2672_s0 = smov [#allocation2]  }
  0x51   :  { %v207_v1 = vpack.c.bf16 %v143_v63, %v142_v62  ;;  %s1731_s2 = sshll.u32 %s2672_s0, 4  ;;  %s1732_s2 = int_to_ptr.vmem [resolvable:$true] %s1731_s2 }
  0x52   :  { %s2648_s20 = scalar_lea.vmem %s1732_s2, 8192  ;;  %p2653_p1 = scmp.lt.s32.totalorder %s1732_s2, %s1732_s2 }
  0x53   :  { %p2649_p0 = scmp.ne.s32.totalorder %s1732_s2, %s2648_s20  ;;  %p2654_p2 = scmp.lt.s32.totalorder %s2648_s20, %s2648_s20 }
  0x55   :  { %p2655_p3 = por %p2654_p2, %p2653_p1 }
  0x56   :  { %2554 = vmatmul.mubr.msk.bf16.gmra.mrb[40].mxu0 %vm216_vm1, %v165_v8 }
  0x57   :  { %2618 = vmatmul.mubr.msk.bf16.gmra.mrb[40].mxu1 %vm216_vm1, %v197_v9  ;;  %2557 = vmatprep.mubr.msk.bf16.mxu0 %vm216_vm1, %v166_v10  ;;  %p2656_p4 = pnand %p2655_p3, %p2649_p0 }
  0x58   :  { %2621 = vmatprep.mubr.msk.bf16.mxu1 %vm216_vm1, %v198_v11 }
  0x5e   :  { %2558 = vmatmul.mubr.msk.bf16.gmra.mrb[44].mxu0 %vm216_vm1, %v167_v20 }
  0x5f   :  { %2622 = vmatmul.mubr.msk.bf16.gmra.mrb[44].mxu1 %vm216_vm1, %v199_v21  ;;  %2561 = vmatprep.mubr.msk.bf16.mxu0 %vm216_vm1, %v168_v22 }
  0x60   :  { %2625 = vmatprep.mubr.msk.bf16.mxu1 %vm216_vm1, %v200_v23 }
  0x66   :  { %2562 = vmatmul.mubr.msk.bf16.gmra.mrb[48].mxu0 %vm216_vm1, %v169_v32 }
  0x67   :  { %2626 = vmatmul.mubr.msk.bf16.gmra.mrb[48].mxu1 %vm216_vm1, %v201_v33  ;;  %2565 = vmatprep.mubr.msk.bf16.mxu0 %vm216_vm1, %v170_v34 }
  0x68   :  { %2629 = vmatprep.mubr.msk.bf16.mxu1 %vm216_vm1, %v202_v35 }
  0x6e   :  { %2566 = vmatmul.mubr.msk.bf16.gmra.mrb[52].mxu0 %vm216_vm1, %v171_v44 }
  0x6f   :  { %2630 = vmatmul.mubr.msk.bf16.gmra.mrb[52].mxu1 %vm216_vm1, %v203_v45  ;;  %2569 = vmatprep.mubr.msk.bf16.mxu0 %vm216_vm1, %v172_v46 }
  0x70   :  { %2633 = vmatprep.mubr.msk.bf16.mxu1 %vm216_vm1, %v204_v47 }
  0x76   :  { %2570 = vmatmul.mubr.msk.bf16.gmra.mrb[56].mxu0 %vm216_vm1, %v173_v56 }
  0x77   :  { %2634 = vmatmul.mubr.msk.bf16.gmra.mrb[56].mxu1 %vm216_vm1, %v205_v57  ;;  %2573 = vmatprep.mubr.msk.bf16.mxu0 %vm216_vm1, %v174_v58 }
  0x78   :  { %2637 = vmatprep.mubr.msk.bf16.mxu1 %vm216_vm1, %v206_v59 }
  0x7e   :  { %2574 = vmatmul.mubr.msk.bf16.gmra.mrb[60].mxu0 %vm216_vm1, %v175_v0 }
  0x7f   :  { %2638 = vmatmul.mubr.msk.bf16.gmra.mrb[60].mxu1 %vm216_vm1, %v207_v1 }
  0xd9   :  { %v2515_v3 = vpop.f32.mrb[0].mxu0 }
  0xda   :  { %v2579_v4 = vpop.f32.mrb[0].mxu1  ;;  %v456_v5 = vadd.f32 %v2515_v3, %v3149_v2  ;;  %v447_v7 = vpop.f32.mrb[1].mxu0 }
  0xdb   :  { %v712_v6 = vadd.f32 %v2579_v4, %v3149_v2  ;;  %v703_v8 = vpop.f32.mrb[1].mxu1  ;;  %v448_v9 = vadd.f32 %v3149_v2, %v447_v7  ;;  %v2516_v11 = vpop.f32.mrb[2].mxu0 }
  0xdc   :  { %v704_v10 = vadd.f32 %v3149_v2, %v703_v8  ;;  %v2580_v12 = vpop.f32.mrb[2].mxu1  ;;  %v459_v13 = vadd.f32 %v2516_v11, %v3149_v2  ;;  %v450_v15 = vpop.f32.mrb[3].mxu0  ;;  %v960_v19 = vmax.f32 %v456_v5, 0.0 }
  0xdd   :  { %v715_v14 = vadd.f32 %v2580_v12, %v3149_v2  ;;  %v706_v16 = vpop.f32.mrb[3].mxu1  ;;  %v451_v17 = vadd.f32 %v3149_v2, %v450_v15  ;;  %v1024_v20 = vmax.f32 %v712_v6, 0.0  ;;  %v958_v23 = vmax.f32 %v448_v9, 0.0 }
  0xde   :  { %v707_v18 = vadd.f32 %v3149_v2, %v706_v16  ;;  %v961_v21 = vmax.f32 %v459_v13, 0.0  ;;  %v1022_v24 = vmax.f32 %v704_v10, 0.0 }
  0xdf   :  { %v1025_v22 = vmax.f32 %v715_v14, 0.0  ;;  %v959_v25 = vmax.f32 %v451_v17, 0.0 }
  0xe0   :  { %v1023_v26 = vmax.f32 %v707_v18, 0.0  ;;  %v2071_v27 = vpack.c.bf16 %v961_v21, %v960_v19 }
  0xe1   :  { %v2231_v28 = vpack.c.bf16 %v1025_v22, %v1024_v20  ;;  %v2066_v29 = vpack.c.bf16 %v959_v25, %v958_v23  ;;  %v2519_v31 = vpop.f32.mrb[4].mxu0 }
  0xe2   :  { %v2226_v30 = vpack.c.bf16 %v1023_v26, %v1022_v24  ;;  %v2583_v32 = vpop.f32.mrb[4].mxu1  ;;  %2383 = vst [vmem:[#allocation2 + $0x8] sm:$0xff] %v2071_v27   ;;  %v472_v33 = vadd.f32 %v2519_v31, %v3149_v2  ;;  %v463_v35 = vpop.f32.mrb[5].mxu0 }
  0xe3   :  { %2415 = vst [vmem:[#allocation2 + $0x108] sm:$0xff] %v2231_v28   ;;  %v728_v34 = vadd.f32 %v2583_v32, %v3149_v2  ;;  %v719_v36 = vpop.f32.mrb[5].mxu1  ;;  %2067 = vst [vmem:[#allocation2] sm:$0xff] %v2066_v29   ;;  %v464_v37 = vadd.f32 %v3149_v2, %v463_v35  ;;  %v2520_v39 = vpop.f32.mrb[6].mxu0 }
  0xe4   :  { %2414 = vst [vmem:[#allocation2 + $0x100] sm:$0xff] %v2226_v30   ;;  %v720_v38 = vadd.f32 %v3149_v2, %v719_v36  ;;  %v2584_v40 = vpop.f32.mrb[6].mxu1  ;;  %v475_v41 = vadd.f32 %v2520_v39, %v3149_v2  ;;  %v466_v43 = vpop.f32.mrb[7].mxu0  ;;  %v964_v47 = vmax.f32 %v472_v33, 0.0 }
  0xe5   :  { %v731_v42 = vadd.f32 %v2584_v40, %v3149_v2  ;;  %v722_v44 = vpop.f32.mrb[7].mxu1  ;;  %v467_v45 = vadd.f32 %v3149_v2, %v466_v43  ;;  %v1028_v48 = vmax.f32 %v728_v34, 0.0  ;;  %v962_v51 = vmax.f32 %v464_v37, 0.0 }
  0xe6   :  { %v723_v46 = vadd.f32 %v3149_v2, %v722_v44  ;;  %v965_v49 = vmax.f32 %v475_v41, 0.0  ;;  %v1026_v52 = vmax.f32 %v720_v38, 0.0 }
  0xe7   :  { %v1029_v50 = vmax.f32 %v731_v42, 0.0  ;;  %v963_v53 = vmax.f32 %v467_v45, 0.0 }
  0xe8   :  { %v1027_v54 = vmax.f32 %v723_v46, 0.0  ;;  %v2081_v55 = vpack.c.bf16 %v965_v49, %v964_v47 }
  0xe9   :  { %v2241_v56 = vpack.c.bf16 %v1029_v50, %v1028_v48  ;;  %v2076_v57 = vpack.c.bf16 %v963_v53, %v962_v51  ;;  %v2523_v59 = vpop.f32.mrb[8].mxu0 }
  0xea   :  { %v2236_v58 = vpack.c.bf16 %v1027_v54, %v1026_v52  ;;  %v2587_v60 = vpop.f32.mrb[8].mxu1  ;;  %2385 = vst [vmem:[#allocation2 + $0x18] sm:$0xff] %v2081_v55   ;;  %v488_v61 = vadd.f32 %v2523_v59, %v3149_v2  ;;  %v479_v63 = vpop.f32.mrb[9].mxu0 }
  0xeb   :  { %2417 = vst [vmem:[#allocation2 + $0x118] sm:$0xff] %v2241_v56   ;;  %v744_v62 = vadd.f32 %v2587_v60, %v3149_v2  ;;  %v735_v0 = vpop.f32.mrb[9].mxu1  ;;  %2384 = vst [vmem:[#allocation2 + $0x10] sm:$0xff] %v2076_v57   ;;  %v480_v1 = vadd.f32 %v3149_v2, %v479_v63  ;;  %v2524_v4 = vpop.f32.mrb[10].mxu0 }
  0xec   :  { %2416 = vst [vmem:[#allocation2 + $0x110] sm:$0xff] %v2236_v58   ;;  %v736_v3 = vadd.f32 %v3149_v2, %v735_v0  ;;  %v2588_v5 = vpop.f32.mrb[10].mxu1  ;;  %v491_v6 = vadd.f32 %v2524_v4, %v3149_v2  ;;  %v482_v8 = vpop.f32.mrb[11].mxu0  ;;  %v968_v12 = vmax.f32 %v488_v61, 0.0 }
  0xed   :  { %v747_v7 = vadd.f32 %v2588_v5, %v3149_v2  ;;  %v738_v9 = vpop.f32.mrb[11].mxu1  ;;  %v483_v10 = vadd.f32 %v3149_v2, %v482_v8  ;;  %v1032_v13 = vmax.f32 %v744_v62, 0.0  ;;  %v966_v16 = vmax.f32 %v480_v1, 0.0 }
  0xee   :  { %v739_v11 = vadd.f32 %v3149_v2, %v738_v9  ;;  %v969_v14 = vmax.f32 %v491_v6, 0.0  ;;  %v1030_v17 = vmax.f32 %v736_v3, 0.0 }
  0xef   :  { %v1033_v15 = vmax.f32 %v747_v7, 0.0  ;;  %v967_v18 = vmax.f32 %v483_v10, 0.0 }
  0xf0   :  { %v1031_v19 = vmax.f32 %v739_v11, 0.0  ;;  %v2091_v20 = vpack.c.bf16 %v969_v14, %v968_v12 }
  0xf1   :  { %v2251_v21 = vpack.c.bf16 %v1033_v15, %v1032_v13  ;;  %v2086_v22 = vpack.c.bf16 %v967_v18, %v966_v16  ;;  %v2527_v24 = vpop.f32.mrb[12].mxu0 }
  0xf2   :  { %v2246_v23 = vpack.c.bf16 %v1031_v19, %v1030_v17  ;;  %v2591_v25 = vpop.f32.mrb[12].mxu1  ;;  %2387 = vst [vmem:[#allocation2 + $0x28] sm:$0xff] %v2091_v20   ;;  %v504_v26 = vadd.f32 %v2527_v24, %v3149_v2  ;;  %v495_v28 = vpop.f32.mrb[13].mxu0 }
  0xf3   :  { %2419 = vst [vmem:[#allocation2 + $0x128] sm:$0xff] %v2251_v21   ;;  %v760_v27 = vadd.f32 %v2591_v25, %v3149_v2  ;;  %v751_v29 = vpop.f32.mrb[13].mxu1  ;;  %2386 = vst [vmem:[#allocation2 + $0x20] sm:$0xff] %v2086_v22   ;;  %v496_v30 = vadd.f32 %v3149_v2, %v495_v28  ;;  %v2528_v32 = vpop.f32.mrb[14].mxu0 }
  0xf4   :  { %2418 = vst [vmem:[#allocation2 + $0x120] sm:$0xff] %v2246_v23   ;;  %v752_v31 = vadd.f32 %v3149_v2, %v751_v29  ;;  %v2592_v33 = vpop.f32.mrb[14].mxu1  ;;  %v507_v34 = vadd.f32 %v2528_v32, %v3149_v2  ;;  %v498_v36 = vpop.f32.mrb[15].mxu0  ;;  %v972_v40 = vmax.f32 %v504_v26, 0.0 }
  0xf5   :  { %v763_v35 = vadd.f32 %v2592_v33, %v3149_v2  ;;  %v754_v37 = vpop.f32.mrb[15].mxu1  ;;  %v499_v38 = vadd.f32 %v3149_v2, %v498_v36  ;;  %v1036_v41 = vmax.f32 %v760_v27, 0.0  ;;  %v970_v44 = vmax.f32 %v496_v30, 0.0 }
  0xf6   :  { %v755_v39 = vadd.f32 %v3149_v2, %v754_v37  ;;  %v973_v42 = vmax.f32 %v507_v34, 0.0  ;;  %v1034_v45 = vmax.f32 %v752_v31, 0.0 }
  0xf7   :  { %v1037_v43 = vmax.f32 %v763_v35, 0.0  ;;  %v971_v46 = vmax.f32 %v499_v38, 0.0 }
  0xf8   :  { %v1035_v47 = vmax.f32 %v755_v39, 0.0  ;;  %v2101_v48 = vpack.c.bf16 %v973_v42, %v972_v40 }
  0xf9   :  { %v2261_v49 = vpack.c.bf16 %v1037_v43, %v1036_v41  ;;  %v2096_v50 = vpack.c.bf16 %v971_v46, %v970_v44  ;;  %v2531_v52 = vpop.f32.mrb[16].mxu0 }
  0xfa   :  { %v2256_v51 = vpack.c.bf16 %v1035_v47, %v1034_v45  ;;  %v2595_v53 = vpop.f32.mrb[16].mxu1  ;;  %2389 = vst [vmem:[#allocation2 + $0x38] sm:$0xff] %v2101_v48   ;;  %v520_v54 = vadd.f32 %v2531_v52, %v3149_v2  ;;  %v511_v56 = vpop.f32.mrb[17].mxu0 }
  0xfb   :  { %2421 = vst [vmem:[#allocation2 + $0x138] sm:$0xff] %v2261_v49   ;;  %v776_v55 = vadd.f32 %v2595_v53, %v3149_v2  ;;  %v767_v57 = vpop.f32.mrb[17].mxu1  ;;  %2388 = vst [vmem:[#allocation2 + $0x30] sm:$0xff] %v2096_v50   ;;  %v512_v58 = vadd.f32 %v3149_v2, %v511_v56  ;;  %v2532_v60 = vpop.f32.mrb[18].mxu0 }
  0xfc   :  { %2420 = vst [vmem:[#allocation2 + $0x130] sm:$0xff] %v2256_v51   ;;  %v768_v59 = vadd.f32 %v3149_v2, %v767_v57  ;;  %v2596_v61 = vpop.f32.mrb[18].mxu1  ;;  %v523_v62 = vadd.f32 %v2532_v60, %v3149_v2  ;;  %v514_v0 = vpop.f32.mrb[19].mxu0  ;;  %v976_v5 = vmax.f32 %v520_v54, 0.0 }
  0xfd   :  { %v779_v63 = vadd.f32 %v2596_v61, %v3149_v2  ;;  %v770_v1 = vpop.f32.mrb[19].mxu1  ;;  %v515_v3 = vadd.f32 %v3149_v2, %v514_v0  ;;  %v1040_v6 = vmax.f32 %v776_v55, 0.0  ;;  %v974_v9 = vmax.f32 %v512_v58, 0.0 }
  0xfe   :  { %v771_v4 = vadd.f32 %v3149_v2, %v770_v1  ;;  %v977_v7 = vmax.f32 %v523_v62, 0.0  ;;  %v1038_v10 = vmax.f32 %v768_v59, 0.0 }
  0xff   :  { %v1041_v8 = vmax.f32 %v779_v63, 0.0  ;;  %v975_v11 = vmax.f32 %v515_v3, 0.0 }
 0x100   :  { %v1039_v12 = vmax.f32 %v771_v4, 0.0  ;;  %v2111_v13 = vpack.c.bf16 %v977_v7, %v976_v5 }
 0x101   :  { %v2271_v14 = vpack.c.bf16 %v1041_v8, %v1040_v6  ;;  %v2106_v15 = vpack.c.bf16 %v975_v11, %v974_v9  ;;  %v2535_v17 = vpop.f32.mrb[20].mxu0 }
 0x102   :  { %v2266_v16 = vpack.c.bf16 %v1039_v12, %v1038_v10  ;;  %v2599_v18 = vpop.f32.mrb[20].mxu1  ;;  %2391 = vst [vmem:[#allocation2 + $0x48] sm:$0xff] %v2111_v13   ;;  %v536_v19 = vadd.f32 %v2535_v17, %v3149_v2  ;;  %v527_v21 = vpop.f32.mrb[21].mxu0 }
 0x103   :  { %2423 = vst [vmem:[#allocation2 + $0x148] sm:$0xff] %v2271_v14   ;;  %v792_v20 = vadd.f32 %v2599_v18, %v3149_v2  ;;  %v783_v22 = vpop.f32.mrb[21].mxu1  ;;  %2390 = vst [vmem:[#allocation2 + $0x40] sm:$0xff] %v2106_v15   ;;  %v528_v23 = vadd.f32 %v3149_v2, %v527_v21  ;;  %v2536_v25 = vpop.f32.mrb[22].mxu0 }
 0x104   :  { %2422 = vst [vmem:[#allocation2 + $0x140] sm:$0xff] %v2266_v16   ;;  %v784_v24 = vadd.f32 %v3149_v2, %v783_v22  ;;  %v2600_v26 = vpop.f32.mrb[22].mxu1  ;;  %v539_v27 = vadd.f32 %v2536_v25, %v3149_v2  ;;  %v530_v29 = vpop.f32.mrb[23].mxu0  ;;  %v980_v33 = vmax.f32 %v536_v19, 0.0 }
 0x105   :  { %v795_v28 = vadd.f32 %v2600_v26, %v3149_v2  ;;  %v786_v30 = vpop.f32.mrb[23].mxu1  ;;  %v531_v31 = vadd.f32 %v3149_v2, %v530_v29  ;;  %v1044_v34 = vmax.f32 %v792_v20, 0.0  ;;  %v978_v37 = vmax.f32 %v528_v23, 0.0 }
 0x106   :  { %v787_v32 = vadd.f32 %v3149_v2, %v786_v30  ;;  %v981_v35 = vmax.f32 %v539_v27, 0.0  ;;  %v1042_v38 = vmax.f32 %v784_v24, 0.0 }
 0x107   :  { %v1045_v36 = vmax.f32 %v795_v28, 0.0  ;;  %v979_v39 = vmax.f32 %v531_v31, 0.0 }
 0x108   :  { %v1043_v40 = vmax.f32 %v787_v32, 0.0  ;;  %v2121_v41 = vpack.c.bf16 %v981_v35, %v980_v33 }
 0x109   :  { %v2281_v42 = vpack.c.bf16 %v1045_v36, %v1044_v34  ;;  %v2116_v43 = vpack.c.bf16 %v979_v39, %v978_v37  ;;  %v2539_v45 = vpop.f32.mrb[24].mxu0 }
 0x10a   :  { %v2276_v44 = vpack.c.bf16 %v1043_v40, %v1042_v38  ;;  %v2603_v46 = vpop.f32.mrb[24].mxu1  ;;  %2393 = vst [vmem:[#allocation2 + $0x58] sm:$0xff] %v2121_v41   ;;  %v552_v47 = vadd.f32 %v2539_v45, %v3149_v2  ;;  %v543_v49 = vpop.f32.mrb[25].mxu0 }
 0x10b   :  { %2425 = vst [vmem:[#allocation2 + $0x158] sm:$0xff] %v2281_v42   ;;  %v808_v48 = vadd.f32 %v2603_v46, %v3149_v2  ;;  %v799_v50 = vpop.f32.mrb[25].mxu1  ;;  %2392 = vst [vmem:[#allocation2 + $0x50] sm:$0xff] %v2116_v43   ;;  %v544_v51 = vadd.f32 %v3149_v2, %v543_v49  ;;  %v2540_v53 = vpop.f32.mrb[26].mxu0 }
 0x10c   :  { %2424 = vst [vmem:[#allocation2 + $0x150] sm:$0xff] %v2276_v44   ;;  %v800_v52 = vadd.f32 %v3149_v2, %v799_v50  ;;  %v2604_v54 = vpop.f32.mrb[26].mxu1  ;;  %v555_v55 = vadd.f32 %v2540_v53, %v3149_v2  ;;  %v546_v57 = vpop.f32.mrb[27].mxu0  ;;  %v984_v61 = vmax.f32 %v552_v47, 0.0 }
 0x10d   :  { %v811_v56 = vadd.f32 %v2604_v54, %v3149_v2  ;;  %v802_v58 = vpop.f32.mrb[27].mxu1  ;;  %v547_v59 = vadd.f32 %v3149_v2, %v546_v57  ;;  %v1048_v62 = vmax.f32 %v808_v48, 0.0  ;;  %v982_v1 = vmax.f32 %v544_v51, 0.0 }
 0x10e   :  { %v803_v60 = vadd.f32 %v3149_v2, %v802_v58  ;;  %v985_v63 = vmax.f32 %v555_v55, 0.0  ;;  %v1046_v3 = vmax.f32 %v800_v52, 0.0 }
 0x10f   :  { %v1049_v0 = vmax.f32 %v811_v56, 0.0  ;;  %v983_v4 = vmax.f32 %v547_v59, 0.0 }
 0x110   :  { %v1047_v5 = vmax.f32 %v803_v60, 0.0  ;;  %v2131_v6 = vpack.c.bf16 %v985_v63, %v984_v61 }
 0x111   :  { %v2291_v7 = vpack.c.bf16 %v1049_v0, %v1048_v62  ;;  %v2126_v8 = vpack.c.bf16 %v983_v4, %v982_v1  ;;  %v2543_v10 = vpop.f32.mrb[28].mxu0 }
 0x112   :  { %v2286_v9 = vpack.c.bf16 %v1047_v5, %v1046_v3  ;;  %v2607_v11 = vpop.f32.mrb[28].mxu1  ;;  %2395 = vst [vmem:[#allocation2 + $0x68] sm:$0xff] %v2131_v6   ;;  %v568_v12 = vadd.f32 %v2543_v10, %v3149_v2  ;;  %v559_v14 = vpop.f32.mrb[29].mxu0 }
 0x113   :  { %2427 = vst [vmem:[#allocation2 + $0x168] sm:$0xff] %v2291_v7   ;;  %v824_v13 = vadd.f32 %v2607_v11, %v3149_v2  ;;  %v815_v15 = vpop.f32.mrb[29].mxu1  ;;  %2394 = vst [vmem:[#allocation2 + $0x60] sm:$0xff] %v2126_v8   ;;  %v560_v16 = vadd.f32 %v3149_v2, %v559_v14  ;;  %v2544_v18 = vpop.f32.mrb[30].mxu0 }
 0x114   :  { %2426 = vst [vmem:[#allocation2 + $0x160] sm:$0xff] %v2286_v9   ;;  %v816_v17 = vadd.f32 %v3149_v2, %v815_v15  ;;  %v2608_v19 = vpop.f32.mrb[30].mxu1  ;;  %v571_v20 = vadd.f32 %v2544_v18, %v3149_v2  ;;  %v562_v22 = vpop.f32.mrb[31].mxu0  ;;  %v988_v26 = vmax.f32 %v568_v12, 0.0 }
 0x115   :  { %v827_v21 = vadd.f32 %v2608_v19, %v3149_v2  ;;  %v818_v23 = vpop.f32.mrb[31].mxu1  ;;  %v563_v24 = vadd.f32 %v3149_v2, %v562_v22  ;;  %v1052_v27 = vmax.f32 %v824_v13, 0.0  ;;  %v986_v30 = vmax.f32 %v560_v16, 0.0 }
 0x116   :  { %v819_v25 = vadd.f32 %v3149_v2, %v818_v23  ;;  %v989_v28 = vmax.f32 %v571_v20, 0.0  ;;  %v1050_v31 = vmax.f32 %v816_v17, 0.0 }
 0x117   :  { %v1053_v29 = vmax.f32 %v827_v21, 0.0  ;;  %v987_v32 = vmax.f32 %v563_v24, 0.0 }
 0x118   :  { %v1051_v33 = vmax.f32 %v819_v25, 0.0  ;;  %v2141_v34 = vpack.c.bf16 %v989_v28, %v988_v26 }
 0x119   :  { %v2301_v35 = vpack.c.bf16 %v1053_v29, %v1052_v27  ;;  %v2136_v36 = vpack.c.bf16 %v987_v32, %v986_v30  ;;  %v2547_v38 = vpop.f32.mrb[32].mxu0 }
 0x11a   :  { %v2296_v37 = vpack.c.bf16 %v1051_v33, %v1050_v31  ;;  %v2611_v39 = vpop.f32.mrb[32].mxu1  ;;  %2397 = vst [vmem:[#allocation2 + $0x78] sm:$0xff] %v2141_v34   ;;  %v584_v40 = vadd.f32 %v2547_v38, %v3149_v2  ;;  %v575_v42 = vpop.f32.mrb[33].mxu0 }
 0x11b   :  { %2429 = vst [vmem:[#allocation2 + $0x178] sm:$0xff] %v2301_v35   ;;  %v840_v41 = vadd.f32 %v2611_v39, %v3149_v2  ;;  %v831_v43 = vpop.f32.mrb[33].mxu1  ;;  %2396 = vst [vmem:[#allocation2 + $0x70] sm:$0xff] %v2136_v36   ;;  %v576_v44 = vadd.f32 %v3149_v2, %v575_v42  ;;  %v2548_v46 = vpop.f32.mrb[34].mxu0 }
 0x11c   :  { %2428 = vst [vmem:[#allocation2 + $0x170] sm:$0xff] %v2296_v37   ;;  %v832_v45 = vadd.f32 %v3149_v2, %v831_v43  ;;  %v2612_v47 = vpop.f32.mrb[34].mxu1  ;;  %v587_v48 = vadd.f32 %v2548_v46, %v3149_v2  ;;  %v578_v50 = vpop.f32.mrb[35].mxu0  ;;  %v992_v54 = vmax.f32 %v584_v40, 0.0 }
 0x11d   :  { %v843_v49 = vadd.f32 %v2612_v47, %v3149_v2  ;;  %v834_v51 = vpop.f32.mrb[35].mxu1  ;;  %v579_v52 = vadd.f32 %v3149_v2, %v578_v50  ;;  %v1056_v55 = vmax.f32 %v840_v41, 0.0  ;;  %v990_v58 = vmax.f32 %v576_v44, 0.0 }
 0x11e   :  { %v835_v53 = vadd.f32 %v3149_v2, %v834_v51  ;;  %v993_v56 = vmax.f32 %v587_v48, 0.0  ;;  %v1054_v59 = vmax.f32 %v832_v45, 0.0 }
 0x11f   :  { %v1057_v57 = vmax.f32 %v843_v49, 0.0  ;;  %v991_v60 = vmax.f32 %v579_v52, 0.0 }
 0x120   :  { %v1055_v61 = vmax.f32 %v835_v53, 0.0  ;;  %v2151_v62 = vpack.c.bf16 %v993_v56, %v992_v54 }
 0x121   :  { %v2311_v63 = vpack.c.bf16 %v1057_v57, %v1056_v55  ;;  %v2146_v0 = vpack.c.bf16 %v991_v60, %v990_v58  ;;  %v2551_v3 = vpop.f32.mrb[36].mxu0 }
 0x122   :  { %v2306_v1 = vpack.c.bf16 %v1055_v61, %v1054_v59  ;;  %v2615_v4 = vpop.f32.mrb[36].mxu1  ;;  %2399 = vst [vmem:[#allocation2 + $0x88] sm:$0xff] %v2151_v62   ;;  %v600_v5 = vadd.f32 %v2551_v3, %v3149_v2  ;;  %v591_v7 = vpop.f32.mrb[37].mxu0 }
 0x123   :  { %2431 = vst [vmem:[#allocation2 + $0x188] sm:$0xff] %v2311_v63   ;;  %v856_v6 = vadd.f32 %v2615_v4, %v3149_v2  ;;  %v847_v8 = vpop.f32.mrb[37].mxu1  ;;  %2398 = vst [vmem:[#allocation2 + $0x80] sm:$0xff] %v2146_v0   ;;  %v592_v9 = vadd.f32 %v3149_v2, %v591_v7  ;;  %v2552_v11 = vpop.f32.mrb[38].mxu0 }
 0x124   :  { %2430 = vst [vmem:[#allocation2 + $0x180] sm:$0xff] %v2306_v1   ;;  %v848_v10 = vadd.f32 %v3149_v2, %v847_v8  ;;  %v2616_v12 = vpop.f32.mrb[38].mxu1  ;;  %v603_v13 = vadd.f32 %v2552_v11, %v3149_v2  ;;  %v594_v15 = vpop.f32.mrb[39].mxu0  ;;  %v996_v19 = vmax.f32 %v600_v5, 0.0 }
 0x125   :  { %v859_v14 = vadd.f32 %v2616_v12, %v3149_v2  ;;  %v850_v16 = vpop.f32.mrb[39].mxu1  ;;  %v595_v17 = vadd.f32 %v3149_v2, %v594_v15  ;;  %v1060_v20 = vmax.f32 %v856_v6, 0.0  ;;  %v994_v23 = vmax.f32 %v592_v9, 0.0 }
 0x126   :  { %v851_v18 = vadd.f32 %v3149_v2, %v850_v16  ;;  %v997_v21 = vmax.f32 %v603_v13, 0.0  ;;  %v1058_v24 = vmax.f32 %v848_v10, 0.0 }
 0x127   :  { %v1061_v22 = vmax.f32 %v859_v14, 0.0  ;;  %v995_v25 = vmax.f32 %v595_v17, 0.0 }
 0x128   :  { %v1059_v26 = vmax.f32 %v851_v18, 0.0  ;;  %v2161_v27 = vpack.c.bf16 %v997_v21, %v996_v19 }
 0x129   :  { %v2321_v28 = vpack.c.bf16 %v1061_v22, %v1060_v20  ;;  %v2156_v29 = vpack.c.bf16 %v995_v25, %v994_v23  ;;  %v2555_v31 = vpop.f32.mrb[40].mxu0 }
 0x12a   :  { %v2316_v30 = vpack.c.bf16 %v1059_v26, %v1058_v24  ;;  %v2619_v32 = vpop.f32.mrb[40].mxu1  ;;  %2401 = vst [vmem:[#allocation2 + $0x98] sm:$0xff] %v2161_v27   ;;  %v616_v33 = vadd.f32 %v2555_v31, %v3149_v2  ;;  %v607_v35 = vpop.f32.mrb[41].mxu0 }
 0x12b   :  { %2433 = vst [vmem:[#allocation2 + $0x198] sm:$0xff] %v2321_v28   ;;  %v872_v34 = vadd.f32 %v2619_v32, %v3149_v2  ;;  %v863_v36 = vpop.f32.mrb[41].mxu1  ;;  %2400 = vst [vmem:[#allocation2 + $0x90] sm:$0xff] %v2156_v29   ;;  %v608_v37 = vadd.f32 %v3149_v2, %v607_v35  ;;  %v2556_v39 = vpop.f32.mrb[42].mxu0 }
 0x12c   :  { %2432 = vst [vmem:[#allocation2 + $0x190] sm:$0xff] %v2316_v30   ;;  %v864_v38 = vadd.f32 %v3149_v2, %v863_v36  ;;  %v2620_v40 = vpop.f32.mrb[42].mxu1  ;;  %v619_v41 = vadd.f32 %v2556_v39, %v3149_v2  ;;  %v610_v43 = vpop.f32.mrb[43].mxu0  ;;  %v1000_v47 = vmax.f32 %v616_v33, 0.0 }
 0x12d   :  { %v875_v42 = vadd.f32 %v2620_v40, %v3149_v2  ;;  %v866_v44 = vpop.f32.mrb[43].mxu1  ;;  %v611_v45 = vadd.f32 %v3149_v2, %v610_v43  ;;  %v1064_v48 = vmax.f32 %v872_v34, 0.0  ;;  %v998_v51 = vmax.f32 %v608_v37, 0.0 }
 0x12e   :  { %v867_v46 = vadd.f32 %v3149_v2, %v866_v44  ;;  %v1001_v49 = vmax.f32 %v619_v41, 0.0  ;;  %v1062_v52 = vmax.f32 %v864_v38, 0.0 }
 0x12f   :  { %v1065_v50 = vmax.f32 %v875_v42, 0.0  ;;  %v999_v53 = vmax.f32 %v611_v45, 0.0 }
 0x130   :  { %v1063_v54 = vmax.f32 %v867_v46, 0.0  ;;  %v2171_v55 = vpack.c.bf16 %v1001_v49, %v1000_v47 }
 0x131   :  { %v2331_v56 = vpack.c.bf16 %v1065_v50, %v1064_v48  ;;  %v2166_v57 = vpack.c.bf16 %v999_v53, %v998_v51  ;;  %v2559_v59 = vpop.f32.mrb[44].mxu0 }
 0x132   :  { %v2326_v58 = vpack.c.bf16 %v1063_v54, %v1062_v52  ;;  %v2623_v60 = vpop.f32.mrb[44].mxu1  ;;  %2403 = vst [vmem:[#allocation2 + $0xa8] sm:$0xff] %v2171_v55   ;;  %v632_v61 = vadd.f32 %v2559_v59, %v3149_v2  ;;  %v623_v63 = vpop.f32.mrb[45].mxu0 }
 0x133   :  { %2435 = vst [vmem:[#allocation2 + $0x1a8] sm:$0xff] %v2331_v56   ;;  %v888_v62 = vadd.f32 %v2623_v60, %v3149_v2  ;;  %v879_v0 = vpop.f32.mrb[45].mxu1  ;;  %2402 = vst [vmem:[#allocation2 + $0xa0] sm:$0xff] %v2166_v57   ;;  %v624_v1 = vadd.f32 %v3149_v2, %v623_v63  ;;  %v2560_v4 = vpop.f32.mrb[46].mxu0 }
 0x134   :  { %2434 = vst [vmem:[#allocation2 + $0x1a0] sm:$0xff] %v2326_v58   ;;  %v880_v3 = vadd.f32 %v3149_v2, %v879_v0  ;;  %v2624_v5 = vpop.f32.mrb[46].mxu1  ;;  %v635_v6 = vadd.f32 %v2560_v4, %v3149_v2  ;;  %v626_v8 = vpop.f32.mrb[47].mxu0  ;;  %v1004_v12 = vmax.f32 %v632_v61, 0.0 }
 0x135   :  { %v891_v7 = vadd.f32 %v2624_v5, %v3149_v2  ;;  %v882_v9 = vpop.f32.mrb[47].mxu1  ;;  %v627_v10 = vadd.f32 %v3149_v2, %v626_v8  ;;  %v1068_v13 = vmax.f32 %v888_v62, 0.0  ;;  %v1002_v16 = vmax.f32 %v624_v1, 0.0 }
 0x136   :  { %v883_v11 = vadd.f32 %v3149_v2, %v882_v9  ;;  %v1005_v14 = vmax.f32 %v635_v6, 0.0  ;;  %v1066_v17 = vmax.f32 %v880_v3, 0.0 }
 0x137   :  { %v1069_v15 = vmax.f32 %v891_v7, 0.0  ;;  %v1003_v18 = vmax.f32 %v627_v10, 0.0 }
 0x138   :  { %v1067_v19 = vmax.f32 %v883_v11, 0.0  ;;  %v2181_v20 = vpack.c.bf16 %v1005_v14, %v1004_v12 }
 0x139   :  { %v2341_v21 = vpack.c.bf16 %v1069_v15, %v1068_v13  ;;  %v2176_v22 = vpack.c.bf16 %v1003_v18, %v1002_v16  ;;  %v2563_v24 = vpop.f32.mrb[48].mxu0 }
 0x13a   :  { %v2336_v23 = vpack.c.bf16 %v1067_v19, %v1066_v17  ;;  %v2627_v25 = vpop.f32.mrb[48].mxu1  ;;  %2405 = vst [vmem:[#allocation2 + $0xb8] sm:$0xff] %v2181_v20   ;;  %v648_v26 = vadd.f32 %v2563_v24, %v3149_v2  ;;  %v639_v28 = vpop.f32.mrb[49].mxu0 }
 0x13b   :  { %2437 = vst [vmem:[#allocation2 + $0x1b8] sm:$0xff] %v2341_v21   ;;  %v904_v27 = vadd.f32 %v2627_v25, %v3149_v2  ;;  %v895_v29 = vpop.f32.mrb[49].mxu1  ;;  %2404 = vst [vmem:[#allocation2 + $0xb0] sm:$0xff] %v2176_v22   ;;  %v640_v30 = vadd.f32 %v3149_v2, %v639_v28  ;;  %v2564_v32 = vpop.f32.mrb[50].mxu0 }
 0x13c   :  { %2436 = vst [vmem:[#allocation2 + $0x1b0] sm:$0xff] %v2336_v23   ;;  %v896_v31 = vadd.f32 %v3149_v2, %v895_v29  ;;  %v2628_v33 = vpop.f32.mrb[50].mxu1  ;;  %v651_v34 = vadd.f32 %v2564_v32, %v3149_v2  ;;  %v642_v36 = vpop.f32.mrb[51].mxu0  ;;  %v1008_v40 = vmax.f32 %v648_v26, 0.0 }
 0x13d   :  { %v907_v35 = vadd.f32 %v2628_v33, %v3149_v2  ;;  %v898_v37 = vpop.f32.mrb[51].mxu1  ;;  %v643_v38 = vadd.f32 %v3149_v2, %v642_v36  ;;  %v1072_v41 = vmax.f32 %v904_v27, 0.0  ;;  %v1006_v44 = vmax.f32 %v640_v30, 0.0 }
 0x13e   :  { %v899_v39 = vadd.f32 %v3149_v2, %v898_v37  ;;  %v1009_v42 = vmax.f32 %v651_v34, 0.0  ;;  %v1070_v45 = vmax.f32 %v896_v31, 0.0 }
 0x13f   :  { %v1073_v43 = vmax.f32 %v907_v35, 0.0  ;;  %v1007_v46 = vmax.f32 %v643_v38, 0.0 }
 0x140   :  { %v1071_v47 = vmax.f32 %v899_v39, 0.0  ;;  %v2191_v48 = vpack.c.bf16 %v1009_v42, %v1008_v40 }
 0x141   :  { %v2351_v49 = vpack.c.bf16 %v1073_v43, %v1072_v41  ;;  %v2186_v50 = vpack.c.bf16 %v1007_v46, %v1006_v44  ;;  %v2567_v52 = vpop.f32.mrb[52].mxu0 }
 0x142   :  { %v2346_v51 = vpack.c.bf16 %v1071_v47, %v1070_v45  ;;  %v2631_v53 = vpop.f32.mrb[52].mxu1  ;;  %2407 = vst [vmem:[#allocation2 + $0xc8] sm:$0xff] %v2191_v48   ;;  %v664_v54 = vadd.f32 %v2567_v52, %v3149_v2  ;;  %v655_v56 = vpop.f32.mrb[53].mxu0 }
 0x143   :  { %2439 = vst [vmem:[#allocation2 + $0x1c8] sm:$0xff] %v2351_v49   ;;  %v920_v55 = vadd.f32 %v2631_v53, %v3149_v2  ;;  %v911_v57 = vpop.f32.mrb[53].mxu1  ;;  %2406 = vst [vmem:[#allocation2 + $0xc0] sm:$0xff] %v2186_v50   ;;  %v656_v58 = vadd.f32 %v3149_v2, %v655_v56  ;;  %v2568_v60 = vpop.f32.mrb[54].mxu0 }
 0x144   :  { %2438 = vst [vmem:[#allocation2 + $0x1c0] sm:$0xff] %v2346_v51   ;;  %v912_v59 = vadd.f32 %v3149_v2, %v911_v57  ;;  %v2632_v61 = vpop.f32.mrb[54].mxu1  ;;  %v667_v62 = vadd.f32 %v2568_v60, %v3149_v2  ;;  %v658_v0 = vpop.f32.mrb[55].mxu0  ;;  %v1012_v5 = vmax.f32 %v664_v54, 0.0 }
 0x145   :  { %v923_v63 = vadd.f32 %v2632_v61, %v3149_v2  ;;  %v914_v1 = vpop.f32.mrb[55].mxu1  ;;  %v659_v3 = vadd.f32 %v3149_v2, %v658_v0  ;;  %v1076_v6 = vmax.f32 %v920_v55, 0.0  ;;  %v1010_v9 = vmax.f32 %v656_v58, 0.0 }
 0x146   :  { %v915_v4 = vadd.f32 %v3149_v2, %v914_v1  ;;  %v1013_v7 = vmax.f32 %v667_v62, 0.0  ;;  %v1074_v10 = vmax.f32 %v912_v59, 0.0 }
 0x147   :  { %v1077_v8 = vmax.f32 %v923_v63, 0.0  ;;  %v1011_v11 = vmax.f32 %v659_v3, 0.0 }
 0x148   :  { %v1075_v12 = vmax.f32 %v915_v4, 0.0  ;;  %v2201_v13 = vpack.c.bf16 %v1013_v7, %v1012_v5 }
 0x149   :  { %v2361_v14 = vpack.c.bf16 %v1077_v8, %v1076_v6  ;;  %v2196_v15 = vpack.c.bf16 %v1011_v11, %v1010_v9  ;;  %v2571_v17 = vpop.f32.mrb[56].mxu0 }
 0x14a   :  { %v2356_v16 = vpack.c.bf16 %v1075_v12, %v1074_v10  ;;  %v2635_v18 = vpop.f32.mrb[56].mxu1  ;;  %2409 = vst [vmem:[#allocation2 + $0xd8] sm:$0xff] %v2201_v13   ;;  %v680_v19 = vadd.f32 %v2571_v17, %v3149_v2  ;;  %v671_v21 = vpop.f32.mrb[57].mxu0 }
 0x14b   :  { %2441 = vst [vmem:[#allocation2 + $0x1d8] sm:$0xff] %v2361_v14   ;;  %v936_v20 = vadd.f32 %v2635_v18, %v3149_v2  ;;  %v927_v22 = vpop.f32.mrb[57].mxu1  ;;  %2408 = vst [vmem:[#allocation2 + $0xd0] sm:$0xff] %v2196_v15   ;;  %v672_v23 = vadd.f32 %v3149_v2, %v671_v21  ;;  %v2572_v25 = vpop.f32.mrb[58].mxu0 }
 0x14c   :  { %2440 = vst [vmem:[#allocation2 + $0x1d0] sm:$0xff] %v2356_v16   ;;  %v928_v24 = vadd.f32 %v3149_v2, %v927_v22  ;;  %v2636_v26 = vpop.f32.mrb[58].mxu1  ;;  %v683_v27 = vadd.f32 %v2572_v25, %v3149_v2  ;;  %v674_v29 = vpop.f32.mrb[59].mxu0  ;;  %v1016_v33 = vmax.f32 %v680_v19, 0.0 }
 0x14d   :  { %v939_v28 = vadd.f32 %v2636_v26, %v3149_v2  ;;  %v930_v30 = vpop.f32.mrb[59].mxu1  ;;  %v675_v31 = vadd.f32 %v3149_v2, %v674_v29  ;;  %v1080_v34 = vmax.f32 %v936_v20, 0.0  ;;  %v1014_v37 = vmax.f32 %v672_v23, 0.0 }
 0x14e   :  { %v931_v32 = vadd.f32 %v3149_v2, %v930_v30  ;;  %v1017_v35 = vmax.f32 %v683_v27, 0.0  ;;  %v1078_v38 = vmax.f32 %v928_v24, 0.0 }
 0x14f   :  { %v1081_v36 = vmax.f32 %v939_v28, 0.0  ;;  %v1015_v39 = vmax.f32 %v675_v31, 0.0 }
 0x150   :  { %v1079_v40 = vmax.f32 %v931_v32, 0.0  ;;  %v2211_v41 = vpack.c.bf16 %v1017_v35, %v1016_v33 }
 0x151   :  { %v2371_v42 = vpack.c.bf16 %v1081_v36, %v1080_v34  ;;  %v2206_v43 = vpack.c.bf16 %v1015_v39, %v1014_v37  ;;  %v2575_v45 = vpop.f32.mrb[60].mxu0 }
 0x152   :  { %v2366_v44 = vpack.c.bf16 %v1079_v40, %v1078_v38  ;;  %v2639_v46 = vpop.f32.mrb[60].mxu1  ;;  %2411 = vst [vmem:[#allocation2 + $0xe8] sm:$0xff] %v2211_v41   ;;  %v696_v47 = vadd.f32 %v2575_v45, %v3149_v2  ;;  %v687_v49 = vpop.f32.mrb[61].mxu0 }
 0x153   :  { %2443 = vst [vmem:[#allocation2 + $0x1e8] sm:$0xff] %v2371_v42   ;;  %v952_v48 = vadd.f32 %v2639_v46, %v3149_v2  ;;  %v943_v50 = vpop.f32.mrb[61].mxu1  ;;  %2410 = vst [vmem:[#allocation2 + $0xe0] sm:$0xff] %v2206_v43   ;;  %v688_v51 = vadd.f32 %v3149_v2, %v687_v49  ;;  %v2576_v53 = vpop.f32.mrb[62].mxu0 }
 0x154   :  { %2442 = vst [vmem:[#allocation2 + $0x1e0] sm:$0xff] %v2366_v44   ;;  %v944_v52 = vadd.f32 %v3149_v2, %v943_v50  ;;  %v2640_v54 = vpop.f32.mrb[62].mxu1  ;;  %v699_v55 = vadd.f32 %v2576_v53, %v3149_v2  ;;  %v690_v57 = vpop.f32.mrb[63].mxu0  ;;  %v1020_v61 = vmax.f32 %v696_v47, 0.0 }
 0x155   :  { %v955_v56 = vadd.f32 %v2640_v54, %v3149_v2  ;;  %v946_v58 = vpop.f32.mrb[63].mxu1  ;;  %v691_v59 = vadd.f32 %v3149_v2, %v690_v57  ;;  %v1084_v62 = vmax.f32 %v952_v48, 0.0  ;;  %v1018_v1 = vmax.f32 %v688_v51, 0.0 }
 0x156   :  { %v947_v60 = vadd.f32 %v3149_v2, %v946_v58  ;;  %v1021_v63 = vmax.f32 %v699_v55, 0.0  ;;  %v1082_v3 = vmax.f32 %v944_v52, 0.0 }
 0x157   :  { %v1085_v0 = vmax.f32 %v955_v56, 0.0  ;;  %v1019_v4 = vmax.f32 %v691_v59, 0.0 }
 0x158   :  { %v1083_v5 = vmax.f32 %v947_v60, 0.0  ;;  %v2221_v6 = vpack.c.bf16 %v1021_v63, %v1020_v61 }
 0x159   :  { %v2381_v7 = vpack.c.bf16 %v1085_v0, %v1084_v62  ;;  %v2216_v8 = vpack.c.bf16 %v1019_v4, %v1018_v1 }
 0x15a   :  { %v2376_v9 = vpack.c.bf16 %v1083_v5, %v1082_v3  ;;  %2413 = vst [vmem:[#allocation2 + $0xf8] sm:$0xff] %v2221_v6  }
 0x15b   :  { %2445 = vst [vmem:[#allocation2 + $0x1f8] sm:$0xff] %v2381_v7   ;;  %2412 = vst [vmem:[#allocation2 + $0xf0] sm:$0xff] %v2216_v8  }
 0x15c   :  { %2444 = vst [vmem:[#allocation2 + $0x1f0] sm:$0xff] %v2376_v9  }
 0x15d   :  { %2659 = shalt.err (!%p2656_p4)
}
 0x15e   :  { %s2660_s22 = scalar_lea.hbm %s3294_s3, 8192 }
 0x15f   :  { %p2661_p5 = scmp.ne.s32.totalorder %s3294_s3, %s2660_s22  ;;  %p2664_p6 = scmp.lt.u32.totalorder %s2660_s22, %s3294_s3 }
 0x161   :  { %p2666_p7 = pnand %p2664_p6, %p2661_p5 }
 0x163   :  { %2669 = shalt.err (!%p2666_p7)
}
 0x164   :  { %s2673_s27 = smov 64   ;;  %s2674_s28 = smov 4  }
 0x165   :  { %1737 = dma.vmem_to_hbm [thread:$0]  %s1732_s2, 8192, %s3294_s3, [#allocation3], %s2673_s27, %s2673_s27, %s2674_s28  }
 0x166   :  { %2670 = dma.done.wait [#allocation3], 8192  }
 0x167   :  { %2671 = vsyncadd [#allocation3], 4294959104 }
 0x168   :  { %1741 = vsyncpa [#allocation3], 1 }

</bundles_post_ra>
